<compile_context>
chip_gen: v7x
topology: tpu7x:2x2x1
jax: 0.10.0
libtpu: 0.0.40
codegen_flags: <defaults>
</compile_context>

<pallas_src>
import functools

import jax
import jax.numpy as jnp
from jax.experimental import pallas as pl
from jax.experimental.pallas import tpu as pltpu


def _round_up(n, m):
    return ((n + m - 1) // m) * m


# ---------------------------------------------------------------------------
# Pallas kernel: per batch-tile  encoder(conv+relu+gap) -> classifier
# ---------------------------------------------------------------------------
def _finetune_kernel(patches_ref, wc_ref, bc_ref, poolw_ref, wcls_ref,
                     bcls_ref, out_ref, *, bt, p_pad, k):
    # patches_ref: (Bt, P_pad, K)  batch tile of im2col patches (f32 or bf16)
    # wc_ref:      (K, H)          conv weight, flattened (cin*kh*kw, hidden)
    # bc_ref:      (1, H)          conv bias (f32)
    # poolw_ref:   (P_pad, 1)      1/P for real patches, 0 for sublane padding
    # wcls_ref:    (H, C_pad)      classifier weight, lane-padded to 128
    # bcls_ref:    (1, C_pad)      classifier bias, lane-padded
    # out_ref:     (Bt, C_pad)     logits for this batch tile
    hidden = wc_ref.shape[1]

    # Conv-as-matmul: one big MXU call per tile (M = Bt*P_pad rows, f32 acc).
    # The reshape is layout-preserving because p_pad % 8 == 0.
    patches = patches_ref[...].reshape(bt * p_pad, k)
    h = jnp.dot(patches, wc_ref[...],
                preferred_element_type=jnp.float32)            # (Bt*P, H)
    h = jnp.maximum(h + bc_ref[...], 0.0)                      # bias + ReLU (VPU, f32)
    h = h.reshape(bt, p_pad, hidden)                           # (Bt, P_pad, H)

    # Masked global-average pool over the patch axis: one VPU mul with the
    # precomputed 1/P weights + an XLU sublane reduce (runs alongside the MXU).
    rep = jnp.sum(h * poolw_ref[...][None, :, :], axis=1)      # (Bt, H)

    # Classifier: Linear(hidden -> n_class), lane-dense N = C_pad.
    logits = jnp.dot(rep, wcls_ref[...],
                     preferred_element_type=jnp.float32)       # (Bt, C_pad)
    out_ref[...] = (logits + bcls_ref[...]).astype(out_ref.dtype)


def semisupervised_finetune(x, wc, bc, wcls, bcls, *, patch=4, block_b=None,
                            matmul_dtype=jnp.float32):
    """x: (B, 3, H, W) NCHW float32.  Returns logits (B, n_class) in f32."""
    B, Cin, H, W = x.shape
    Hp, Wp = H // patch, W // patch
    P = Hp * Wp
    K = Cin * patch * patch
    hidden = wc.shape[1]
    n_class = wcls.shape[1]

    # --- batch tile selection ------------------------------------------------
    # Memory-bound kernel: amortize per-grid-step overhead over a large
    # contiguous DMA.  Cap at 512 rows so double-buffered (Bt, P, K) blocks plus
    # the f32 h intermediate stay comfortably inside the 48 MiB VMEM budget, and
    # aim for >= 4 grid steps when B allows so the "parallel" axis gives both
    # v7x TensorCores work.
    if block_b is None:
        block_b = min(_round_up(max(1, (B + 3) // 4), 8), 512)
    bt = _round_up(block_b, 8)
    b_pad = _round_up(B, bt)
    nb = b_pad // bt

    # Pad the patch count to the 8-sublane tile so the in-kernel reshapes
    # (Bt, P, K) <-> (Bt*P, ...) are layout-preserving (no per-step XLU copy).
    p_pad = _round_up(P, 8)

    if b_pad != B:
        x = jnp.pad(x, ((0, b_pad - B), (0, 0), (0, 0), (0, 0)))

    # im2col for the stride==kernel patch conv, materialized in HBM (no
    # allow_input_fusion): a fused transpose would make the kernel's input DMA a
    # 16-byte-granularity gather; a contiguous (Bt, P, K) stream keeps the DMA
    # near HBM peak, which dominates for this memory-bound kernel.
    # TODO(synk): produce x upstream in a patch-major layout so no transpose is
    # needed at all.
    patches = x.reshape(b_pad, Cin, Hp, patch, Wp, patch)
    patches = patches.transpose(0, 2, 4, 1, 3, 5).reshape(b_pad, P, K)
    if p_pad != P:
        patches = jnp.pad(patches, ((0, 0), (0, p_pad - P), (0, 0)))

    # Optional bf16 inputs to the conv matmul (halves the dominant HBM stream).
    # Accumulation and all post-matmul math stay f32 on every generation.
    patches = patches.astype(matmul_dtype)
    wc_in = wc.astype(matmul_dtype)
    bc_in = bc.astype(jnp.float32).reshape(1, hidden)

    # Lane-dense classifier / output: pad n_class to a multiple of 128 so the
    # output stores are unmasked and the MXU N dim is full; slice on host.
    c_pad = _round_up(n_class, 128)
    wcls_p = jnp.pad(wcls.astype(jnp.float32), ((0, 0), (0, c_pad - n_class)))
    bcls_p = jnp.pad(bcls.astype(jnp.float32).reshape(1, n_class),
                     ((0, 0), (0, c_pad - n_class)))

    # Pool weights: 1/P on real patches, 0 on the sublane padding.
    poolw = jnp.zeros((p_pad, 1), jnp.float32).at[:P, :].set(1.0 / P)

    kernel = functools.partial(_finetune_kernel, bt=bt, p_pad=p_pad, k=K)

    out = pl.pallas_call(
        kernel,
        out_shape=jax.ShapeDtypeStruct((b_pad, c_pad), jnp.float32),
        grid_spec=pltpu.PrefetchScalarGridSpec(
            num_scalar_prefetch=0,
            grid=(nb,),
            in_specs=[
                # If DMA latency is still exposed after the larger tile, the
                # next knob is pipeline_mode=pl.Buffered(3) on this spec —
                # NOT zero-padding K/hidden (that inflates HBM traffic ~2.7x).
                pl.BlockSpec((bt, p_pad, K), lambda b: (b, 0, 0)),
                pl.BlockSpec((K, hidden), lambda b: (0, 0)),
                pl.BlockSpec((1, hidden), lambda b: (0, 0)),
                pl.BlockSpec((p_pad, 1), lambda b: (0, 0)),
                pl.BlockSpec((hidden, c_pad), lambda b: (0, 0)),
                pl.BlockSpec((1, c_pad), lambda b: (0, 0)),
            ],
            out_specs=pl.BlockSpec((bt, c_pad), lambda b: (b, 0)),
        ),
        compiler_params=pltpu.CompilerParams(
            # "parallel" shards the batch-tile axis across v7x's two
            # TensorCores; harmless no-op on single-TC v5e/v6e.
            dimension_semantics=("parallel",),
            # Raise v5e's 16 MiB default scoped VMEM for the larger tile while
            # staying inside v7x's 64 MiB physical VMEM with headroom.
            vmem_limit_bytes=48 * 1024 * 1024,
        ),
    )(patches, wc_in, bc_in, poolw, wcls_p, bcls_p)
    return out[:B, :n_class]


# ---------------------------------------------------------------------------
# Pure-JAX reference for correctness checking
# ---------------------------------------------------------------------------
def reference(x, wc, bc, wcls, bcls, *, patch=4):
    B, Cin, H, W = x.shape
    Hp, Wp = H // patch, W // patch
    P, K = Hp * Wp, Cin * patch * patch
    patches = x.reshape(B, Cin, Hp, patch, Wp, patch)
    patches = patches.transpose(0, 2, 4, 1, 3, 5).reshape(B, P, K)
    h = jnp.maximum(patches @ wc + bc, 0.0)          # (B, P, hidden)
    rep = h.mean(axis=1)                             # (B, hidden)  == encoder(x)
    return rep @ wcls + bcls                         # (B, n_class)


if __name__ == "__main__":
    key = jax.random.PRNGKey(0)
    B, Cin, Himg, Wimg = 2, 3, 16, 16
    PATCH = 4
    HIDDEN = 32     # encoder feature dim (the `c` probed in Downstream.__init__)
    N_CLASS = 8
    K = Cin * PATCH * PATCH

    k_x, k_wc, k_bc, k_wcls, k_bcls = jax.random.split(key, 5)
    x = jax.random.normal(k_x, (B, Cin, Himg, Wimg), dtype=jnp.float32)

    # Deterministic parameter init (PyTorch-style uniform fan-in bounds).
    bound_c = 1.0 / float(K) ** 0.5
    wc = jax.random.uniform(k_wc, (K, HIDDEN), jnp.float32, -bound_c, bound_c)
    bc = jax.random.uniform(k_bc, (1, HIDDEN), jnp.float32, -bound_c, bound_c)
    bound_l = 1.0 / float(HIDDEN) ** 0.5
    wcls = jax.random.uniform(k_wcls, (HIDDEN, N_CLASS), jnp.float32, -bound_l, bound_l)
    bcls = jax.random.uniform(k_bcls, (1, N_CLASS), jnp.float32, -bound_l, bound_l)

    ref = reference(x, wc, bc, wcls, bcls, patch=PATCH)

    # f32 matmul-input path: exact semantics vs reference, strict tolerance.
    out = semisupervised_finetune(x, wc, bc, wcls, bcls, patch=PATCH)
    out = jax.block_until_ready(out)
    assert out.shape == (B, N_CLASS)
    assert jnp.allclose(out, ref, atol=1e-5, rtol=1e-5), "f32 mismatch vs reference"

    # bf16 matmul-input path (halves the dominant HBM stream, f32 accumulation):
    # tolerance loosened accordingly.
    out_bf16 = semisupervised_finetune(x, wc, bc, wcls, bcls, patch=PATCH,
                                       matmul_dtype=jnp.bfloat16)
    out_bf16 = jax.block_until_ready(out_bf16)
    assert out_bf16.shape == (B, N_CLASS)
    assert jnp.allclose(out_bf16, ref, atol=5e-2, rtol=5e-2), "bf16 mismatch vs reference"

    print("KERNEL_OK")
</pallas_src>

<mosaic_0001>
module attributes {stable_mosaic.version = 11 : i64} {
  func.func @_finetune_kernel(%arg0: i32, %arg1: memref<8x16x48xf32, #tpu.memory_space<vmem>>, %arg2: memref<48x32xf32, #tpu.memory_space<vmem>>, %arg3: memref<1x32xf32, #tpu.memory_space<vmem>>, %arg4: memref<16x1xf32, #tpu.memory_space<vmem>>, %arg5: memref<32x128xf32, #tpu.memory_space<vmem>>, %arg6: memref<1x128xf32, #tpu.memory_space<vmem>>, %arg7: memref<8x128xf32, #tpu.memory_space<vmem>>) attributes {dimension_semantics = [#tpu.dimension_semantics<parallel>], iteration_bounds = array<i64: 1>, scalar_prefetch = 0 : i64, scratch_operands = 0 : i64, tpu.core_type = #tpu.core_type<tc>, window_params = [{transform_indices = @transform_0, window_bounds = array<i64: 8, 16, 48>}, {pipeline_mode = #tpu.pipeline_mode<synchronous>, transform_indices = @transform_1, window_bounds = array<i64: 48, 32>}, {pipeline_mode = #tpu.pipeline_mode<synchronous>, transform_indices = @transform_2, window_bounds = array<i64: 1, 32>}, {pipeline_mode = #tpu.pipeline_mode<synchronous>, transform_indices = @transform_3, window_bounds = array<i64: 16, 1>}, {pipeline_mode = #tpu.pipeline_mode<synchronous>, transform_indices = @transform_4, window_bounds = array<i64: 32, 128>}, {pipeline_mode = #tpu.pipeline_mode<synchronous>, transform_indices = @transform_5, window_bounds = array<i64: 1, 128>}, {transform_indices = @transform_6, window_bounds = array<i64: 8, 128>}]} {
    %c0 = arith.constant 0 : index
    %c0_0 = arith.constant 0 : index
    %c0_1 = arith.constant 0 : index
    %0 = vector.load %arg1[%c0, %c0_0, %c0_1] : memref<8x16x48xf32, #tpu.memory_space<vmem>>, vector<8x16x48xf32>
    %1 = vector.shape_cast %0 : vector<8x16x48xf32> to vector<128x48xf32>
    %c0_2 = arith.constant 0 : index
    %c0_3 = arith.constant 0 : index
    %2 = vector.load %arg2[%c0_2, %c0_3] : memref<48x32xf32, #tpu.memory_space<vmem>>, vector<48x32xf32>
    %cst = arith.constant dense<0.000000e+00> : vector<128x32xf32>
    %3 = tpu.matmul %1, %2, %cst {dimension_numbers = #tpu.dot_dimension_numbers<[1], [0], [0], [1], [0, 0, 1, 1], [], []>} : vector<128x48xf32>, vector<48x32xf32>, vector<128x32xf32> -> vector<128x32xf32>
    %c0_4 = arith.constant 0 : index
    %c0_5 = arith.constant 0 : index
    %4 = vector.load %arg3[%c0_4, %c0_5] : memref<1x32xf32, #tpu.memory_space<vmem>>, vector<1x32xf32>
    %5 = vector.broadcast %4 : vector<1x32xf32> to vector<128x32xf32>
    %6 = arith.addf %3, %5 : vector<128x32xf32>
    %cst_6 = arith.constant 0.000000e+00 : f32
    %7 = vector.broadcast %cst_6 : f32 to vector<128x32xf32>
    %8 = arith.maximumf %6, %7 : vector<128x32xf32>
    %9 = vector.shape_cast %8 : vector<128x32xf32> to vector<8x16x32xf32>
    %c0_7 = arith.constant 0 : index
    %c0_8 = arith.constant 0 : index
    %10 = vector.load %arg4[%c0_7, %c0_8] : memref<16x1xf32, #tpu.memory_space<vmem>>, vector<16x1xf32>
    %11 = vector.shape_cast %10 : vector<16x1xf32> to vector<1x16x1xf32>
    %12 = vector.broadcast %11 : vector<1x16x1xf32> to vector<8x16x32xf32>
    %13 = arith.mulf %9, %12 : vector<8x16x32xf32>
    %cst_9 = arith.constant dense<0.000000e+00> : vector<8x32xf32>
    %14 = vector.multi_reduction <add>, %13, %cst_9 [1] : vector<8x16x32xf32> to vector<8x32xf32>
    %c0_10 = arith.constant 0 : index
    %c0_11 = arith.constant 0 : index
    %15 = vector.load %arg5[%c0_10, %c0_11] : memref<32x128xf32, #tpu.memory_space<vmem>>, vector<32x128xf32>
    %cst_12 = arith.constant dense<0.000000e+00> : vector<8x128xf32>
    %16 = tpu.matmul %14, %15, %cst_12 {dimension_numbers = #tpu.dot_dimension_numbers<[1], [0], [0], [1], [0, 0, 1, 1], [], []>} : vector<8x32xf32>, vector<32x128xf32>, vector<8x128xf32> -> vector<8x128xf32>
    %c0_13 = arith.constant 0 : index
    %c0_14 = arith.constant 0 : index
    %17 = vector.load %arg6[%c0_13, %c0_14] : memref<1x128xf32, #tpu.memory_space<vmem>>, vector<1x128xf32>
    %18 = vector.broadcast %17 : vector<1x128xf32> to vector<8x128xf32>
    %19 = arith.addf %16, %18 : vector<8x128xf32>
    %c0_15 = arith.constant 0 : index
    %c0_16 = arith.constant 0 : index
    %20 = vector.load %arg7[%c0_15, %c0_16] : memref<8x128xf32, #tpu.memory_space<vmem>>, vector<8x128xf32>
    tpu.vector_store %arg7[%c0_15, %c0_16], %19 {strides = array<i32>} : memref<8x128xf32, #tpu.memory_space<vmem>>, vector<8x128xf32>,
    return
  }
  func.func @transform_0(%arg0: i32) -> (i32, i32, i32) {
    %c0_i32 = arith.constant 0 : i32
    %c0_i32_0 = arith.constant 0 : i32
    %c0_i32_1 = arith.constant 0 : i32
    return %arg0, %c0_i32, %c0_i32_0 : i32, i32, i32
  }
  func.func @transform_1(%arg0: i32) -> (i32, i32) {
    %c0_i32 = arith.constant 0 : i32
    %c0_i32_0 = arith.constant 0 : i32
    %c0_i32_1 = arith.constant 0 : i32
    return %c0_i32, %c0_i32_0 : i32, i32
  }
  func.func @transform_2(%arg0: i32) -> (i32, i32) {
    %c0_i32 = arith.constant 0 : i32
    %c0_i32_0 = arith.constant 0 : i32
    %c0_i32_1 = arith.constant 0 : i32
    return %c0_i32, %c0_i32_0 : i32, i32
  }
  func.func @transform_3(%arg0: i32) -> (i32, i32) {
    %c0_i32 = arith.constant 0 : i32
    %c0_i32_0 = arith.constant 0 : i32
    %c0_i32_1 = arith.constant 0 : i32
    return %c0_i32, %c0_i32_0 : i32, i32
  }
  func.func @transform_4(%arg0: i32) -> (i32, i32) {
    %c0_i32 = arith.constant 0 : i32
    %c0_i32_0 = arith.constant 0 : i32
    %c0_i32_1 = arith.constant 0 : i32
    return %c0_i32, %c0_i32_0 : i32, i32
  }
  func.func @transform_5(%arg0: i32) -> (i32, i32) {
    %c0_i32 = arith.constant 0 : i32
    %c0_i32_0 = arith.constant 0 : i32
    %c0_i32_1 = arith.constant 0 : i32
    return %c0_i32, %c0_i32_0 : i32, i32
  }
  func.func @transform_6(%arg0: i32) -> (i32, i32) {
    %c0_i32 = arith.constant 0 : i32
    %c0_i32_0 = arith.constant 0 : i32
    return %arg0, %c0_i32 : i32, i32
  }
}

</mosaic_0001>

<bundles_post_ra>
// kernel: tpu_custom_call.1
= control target key start
LH: loop header
LB: loop body
LE: loop exit
PB: predicated region body
PF: predicated region fallthrough
CT: control target
= control target key end

     0   :  { %11 = vsyncpa [#allocation3], 0  ;;  %s857_s0 = inlined_call_operand.hbm [shape: f32[8,16,48], index: 0, kind: input, shape index: {}]   ;;  %s858_s1 = inlined_call_operand.vmem [shape: f32[48,32], index: 1, kind: input, shape index: {}]   ;;  %s859_s2 = inlined_call_operand.vmem [shape: f32[1,32], index: 2, kind: input, shape index: {}]   ;;  %s860_s3 = inlined_call_operand.vmem [shape: f32[16,1], index: 3, kind: input, shape index: {}]   ;;  %s861_s4 = inlined_call_operand.vmem [shape: f32[32,128], index: 4, kind: input, shape index: {}]   ;;  %s862_s5 = inlined_call_operand.vmem [shape: f32[1,128], index: 5, kind: input, shape index: {}]   ;;  %s863_s6 = inlined_call_operand.hbm [shape: f32[8,128], index: 6, kind: output, shape index: {}]  }
   0x1   :  { %12 = vsyncpa [#allocation4], 0  ;;  %s673_s21 = smov [#allocation2]   ;;  %s625_s25 = scalar_lea.hbm %s857_s0, 2048 }
   0x2   :  { %s18_s22 = sshll.u32 %s673_s21, 4  ;;  %p626_p0 = scmp.ne.s32.totalorder %s857_s0, %s625_s25  ;;  %s19_s22 = int_to_ptr.vmem [resolvable:$true] %s18_s22 }
   0x3   :  { %p629_p1 = scmp.lt.u32.totalorder %s625_s25, %s857_s0 }
   0x5   :  { %p631_p2 = pnand %p629_p1, %p626_p0 }
   0x7   :  { %634 = shalt.err (!%p631_p2)
}
   0x8   :  { %s635_s30 = scalar_lea.vmem %s19_s22, 2048  ;;  %p640_p4 = scmp.lt.s32.totalorder %s19_s22, %s19_s22 }
   0x9   :  { %p636_p3 = scmp.ne.s32.totalorder %s19_s22, %s635_s30  ;;  %p641_p5 = scmp.lt.s32.totalorder %s635_s30, %s635_s30 }
   0xb   :  { %p642_p6 = por %p641_p5, %p640_p4 }
   0xd   :  { %p643_p7 = pnand %p642_p6, %p636_p3 }
   0xf   :  { %646 = shalt.err (!%p643_p7)
}
  0x10   :  { %s674_s7 = smov 128   ;;  %s675_s8 = smov 8  }
  0x11   :  { %24 = dma.hbm_to_vmem [thread:$0]  %s857_s0, 2048, %s19_s22, [#allocation3], %s674_s7, %s674_s7, %s675_s8  }
  0x12   :  { %669 = dma.done.wait [#allocation3], 2048  }
  0x13   :  { %670 = vsyncadd [#allocation3], 4294965248  ;;  %v676_v0 = vmov 0   ;;  %v54_v1 = vld [vmem:[%s858_s1] sm:$0xff]  ;;  %v55_v2 = vld [vmem:[%s858_s1 + $0x8] sm:$0xff]  ;;  %vm67_vm0 = vcmask 392192  }
  0x14   :  { %624 = vset.pattern.permute.xlu0 %v676_v0  ;;  %v56_v3 = vld [vmem:[%s858_s1 + $0x10] sm:$0xff]  ;;  %v592_v4 = vpack.c.bf16 %v55_v2, %v54_v1  ;;  %v57_v5 = vld [vmem:[%s858_s1 + $0x18] sm:$0xff]  ;;  %v58_v7 = vld [vmem:[%s858_s1 + $0x20] sm:$0xff]  ;;  %v677_v31 = vmov 0.0|0.0   ;;  %vm678_vm1 = vmmov 0   ;;  %v679_v35 = vmov 0.0  }
  0x15   :  { %v596_v6 = vpack.c.bf16 %v57_v5, %v56_v3  ;;  %v59_v8 = vld [vmem:[%s858_s1 + $0x28] sm:$0xff]  ;;  %v38_v9 = vld [vmem:[#allocation2] sm:$0xff]  ;;  %v48_v10 = vld [vmem:[#allocation2 + $0x50] sm:$0xff]  ;;  %vm305_vm2 = vcmask 261120   ;;  %vm397_vm3 = vcmask 1041409   ;;  %vm399_vm4 = vcmask 1042434  }
  0x16   :  { %593 = vmatprep.subr.bf16.mxu0 %v592_v4  ;;  %610 = vmatprep.subr.bf16.mxu1 %v592_v4  ;;  %v600_v11 = vpack.c.bf16 %v59_v8, %v58_v7  ;;  %v277_v12 = vld [vmem:[%s860_s3] sm:$0xff]  ;;  %v278_v13 = vld [vmem:[%s860_s3 + $0x8] sm:$0xff]  ;;  %v49_v15 = vld [vmem:[#allocation2 + $0x58] sm:$0xff]  ;;  %vm401_vm5 = vcmask 1043459   ;;  %vm403_vm6 = vcmask 1044484   ;;  %vm405_vm7 = vcmask 1045509  }
  0x17   :  { %595 = vmatpush3.bf16.msra.mxu0 %v592_v4  ;;  %613 = vmatpush3.bf16.msra.mxu1 %v592_v4  ;;  %v39_v14 = vld [vmem:[#allocation2 + $0x8] sm:$0xff]  ;;  %v40_v16 = vld [vmem:[#allocation2 + $0x10] sm:$0xff]  ;;  %v50_v17 = vld [vmem:[#allocation2 + $0x60] sm:$0xff]  ;;  %vm407_vm8 = vcmask 1046534   ;;  %vm409_vm9 = vcmask 1047559   ;;  %s680_s10 = smov [#allocation5]  }
  0x18   :  { %597 = vmatprep.subr.bf16.mxu0 %v596_v6  ;;  %611 = vmatprep.subr.bf16.mxu1 %v596_v6  ;;  %v41_v18 = vld [vmem:[#allocation2 + $0x18] sm:$0xff]  ;;  %v51_v19 = vld [vmem:[#allocation2 + $0x68] sm:$0xff]  ;;  %v42_v20 = vld [vmem:[#allocation2 + $0x20] sm:$0xff]  ;;  %s490_s11 = sshll.u32 %s680_s10, 4  ;;  %s491_s11 = int_to_ptr.vmem [resolvable:$true] %s490_s11 }
  0x19   :  { %557 = vmatprep.mubr.msk.f32.mxu0 %vm67_vm0, %v38_v9  ;;  %572 = vmatprep.mubr.msk.f32.mxu1 %vm67_vm0, %v48_v10  ;;  %v52_v21 = vld [vmem:[#allocation2 + $0x70] sm:$0xff]  ;;  %v43_v22 = vld [vmem:[#allocation2 + $0x28] sm:$0xff]  ;;  %v53_v23 = vld [vmem:[#allocation2 + $0x78] sm:$0xff]  ;;  %s647_s12 = scalar_lea.vmem %s491_s11, 128  ;;  %p652_p9 = scmp.lt.s32.totalorder %s491_s11, %s491_s11 }
  0x1a   :  { %281 = vperm.xlu0 %624, %v277_v12   ;;  %v44_v24 = vld [vmem:[#allocation2 + $0x30] sm:$0xff]  ;;  %v45_v25 = vld [vmem:[#allocation2 + $0x38] sm:$0xff]  ;;  %v46_v26 = vld [vmem:[#allocation2 + $0x40] sm:$0xff]  ;;  %p648_p8 = scmp.ne.s32.totalorder %s491_s11, %s647_s12  ;;  %p653_p10 = scmp.lt.s32.totalorder %s647_s12, %s647_s12 }
  0x1b   :  { %599 = vmatpush3.bf16.msra.mxu0 %v596_v6  ;;  %614 = vmatpush3.bf16.msra.mxu1 %v596_v6  ;;  %v47_v27 = vld [vmem:[#allocation2 + $0x48] sm:$0xff]  ;;  %v378_v28 = vld [vmem:[%s861_s4] sm:$0xff]  ;;  %v380_v32 = vld [vmem:[%s861_s4 + $0x10] sm:$0xff] }
  0x1c   :  { %601 = vmatprep.subr.bf16.mxu0 %v600_v11  ;;  %612 = vmatprep.subr.bf16.mxu1 %v600_v11  ;;  %v379_v29 = vld [vmem:[%s861_s4 + $0x8] sm:$0xff]  ;;  %v381_v33 = vld [vmem:[%s861_s4 + $0x18] sm:$0xff]  ;;  %v785_v37 = vld [vmem:[%s859_s2] ss:$0 sm:$0xff]  ;;  %p654_p11 = por %p653_p10, %p652_p9 }
  0x1d   :  { %v605_v30 = vpack.c.bf16 %v379_v29, %v378_v28  ;;  %v608_v34 = vpack.c.bf16 %v381_v33, %v380_v32 }
  0x1e   :  { %286 = vperm.xlu0 %624, %v278_v13   ;;  %p655_p12 = pnand %p654_p11, %p648_p8 }
  0x1f   :  { %603 = vmatpush3.bf16.msra.mxu0 %v600_v11  ;;  %615 = vmatpush3.bf16.msra.mxu1 %v600_v11 }
  0x20   :  { %604 = vmatprep.subr.bf16.mxu1 %v677_v31 }
  0x22   :  { %558 = vmatmul.mubr.msk.f32.vlgmr.msra.gmra.mrb[0].mxu0 %vm67_vm0, %v39_v14  ;;  %573 = vmatmul.mubr.msk.f32.vlgmr.msra.gmra.mrb[0].mxu1 %vm67_vm0, %v49_v15 }
  0x23   :  { %560 = vmatprep.mubr.msk.f32.mxu0 %vm67_vm0, %v40_v16  ;;  %575 = vmatprep.mubr.msk.f32.mxu1 %vm67_vm0, %v50_v17 }
  0x24   :  { %606 = vmatpush3.bf16.msra.mxu1 %v605_v30 }
  0x25   :  { %607 = vmatprep.subr.bf16.mxu1 %v677_v31 }
  0x26   :  { %561 = vmatmul.mubr.msk.f32.gmra.mrb[2].mxu0 %vm67_vm0, %v41_v18  ;;  %576 = vmatmul.mubr.msk.f32.gmra.mrb[2].mxu1 %vm67_vm0, %v51_v19 }
  0x27   :  { %563 = vmatprep.mubr.msk.f32.mxu0 %vm67_vm0, %v42_v20  ;;  %578 = vmatprep.mubr.msk.f32.mxu1 %vm67_vm0, %v52_v21 }
  0x28   :  { %609 = vmatpush3.bf16.msra.mxu1 %v608_v34 }
  0x2a   :  { %564 = vmatmul.mubr.msk.f32.gmra.mrb[4].mxu0 %vm67_vm0, %v43_v22  ;;  %579 = vmatmul.mubr.msk.f32.gmra.mrb[4].mxu1 %vm67_vm0, %v53_v23 }
  0x2b   :  { %566 = vmatprep.mubr.msk.f32.mxu0 %vm67_vm0, %v44_v24  ;;  %589 = vmatprep.mubr.msk.f32.mxu1 %vm678_vm1, %v679_v35 }
  0x2e   :  { %567 = vmatmul.mubr.msk.f32.gmra.mrb[6].mxu0 %vm67_vm0, %v45_v25 }
  0x2f   :  { %569 = vmatprep.mubr.msk.f32.mxu0 %vm67_vm0, %v46_v26 }
  0x32   :  { %570 = vmatmul.mubr.msk.f32.gmra.mrb[8].mxu0 %vm67_vm0, %v47_v27 }
  0x99   :  { %v780_v36 = vpop.permute.xlu0 %281 }
  0x9d   :  { %v791_v46 = vpop.permute.xlu0 %286 }
  0xf5   :  { %v559_v38 = vpop.f32.mrb[0].mxu0  ;;  %v574_v39 = vpop.f32.mrb[0].mxu1 }
  0xf6   :  { %v188_v40 = vadd.f32 %v559_v38, %v785_v37  ;;  %v182_v41 = vpop.f32.mrb[1].mxu0  ;;  %v238_v42 = vadd.f32 %v574_v39, %v785_v37  ;;  %v232_v43 = vpop.f32.mrb[1].mxu1 }
  0xf7   :  { %v183_v44 = vadd.f32 %v785_v37, %v182_v41  ;;  %v233_v45 = vadd.f32 %v785_v37, %v232_v43 }
  0xf8   :  { %v262_v47 = vmax.f32 %v188_v40, 0.0  ;;  %v272_v48 = vmax.f32 %v238_v42, 0.0 }
  0xf9   :  { %v261_v49 = vmax.f32 %v183_v44, 0.0  ;;  %v271_v50 = vmax.f32 %v233_v45, 0.0  ;;  %v562_v51 = vpop.f32.mrb[2].mxu0  ;;  %v577_v52 = vpop.f32.mrb[2].mxu1 }
  0xfa   :  { %v290_v53 = vmul.f32 %v791_v46, %v262_v47  ;;  %v300_v54 = vmul.f32 %v791_v46, %v272_v48  ;;  %v198_v55 = vadd.f32 %v562_v51, %v785_v37  ;;  %v248_v56 = vadd.f32 %v577_v52, %v785_v37  ;;  %v192_v57 = vpop.f32.mrb[3].mxu0  ;;  %v242_v58 = vpop.f32.mrb[3].mxu1 }
  0xfb   :  { %v289_v59 = vmul.f32 %v780_v36, %v261_v49  ;;  %v299_v60 = vmul.f32 %v780_v36, %v271_v50  ;;  %v193_v61 = vadd.f32 %v785_v37, %v192_v57  ;;  %v243_v62 = vadd.f32 %v785_v37, %v242_v58 }
  0xfc   :  { %v307_v63 = vsel %vm305_vm2, %v290_v53, 0.0  ;;  %v352_v0 = vsel %vm305_vm2, %v300_v54, 0.0  ;;  %v264_v1 = vmax.f32 %v198_v55, 0.0  ;;  %v274_v2 = vmax.f32 %v248_v56, 0.0 }
  0xfd   :  { %v306_v3 = vsel %vm305_vm2, %v289_v59, 0.0  ;;  %v351_v4 = vsel %vm305_vm2, %v299_v60, 0.0  ;;  %v263_v5 = vmax.f32 %v193_v61, 0.0  ;;  %v273_v6 = vmax.f32 %v243_v62, 0.0  ;;  %v565_v7 = vpop.f32.mrb[4].mxu0  ;;  %v580_v8 = vpop.f32.mrb[4].mxu1 }
  0xfe   :  { %v308_v9 = vadd.f32 %v307_v63, %v306_v3  ;;  %v805_v10 = vadd.f32 %v352_v0, %v351_v4  ;;  %v292_v11 = vmul.f32 %v791_v46, %v264_v1  ;;  %v302_v12 = vmul.f32 %v791_v46, %v274_v2  ;;  %v202_v13 = vpop.f32.mrb[5].mxu0  ;;  %v252_v14 = vpop.f32.mrb[5].mxu1 }
  0xff   :  { %v291_v15 = vmul.f32 %v780_v36, %v263_v5  ;;  %v301_v16 = vmul.f32 %v780_v36, %v273_v6  ;;  %v208_v17 = vadd.f32 %v565_v7, %v785_v37  ;;  %v258_v18 = vadd.f32 %v580_v8, %v785_v37 }
 0x100   :  { %v309_v19 = vrot.slane %v308_v9, 4  ;;  %v316_v20 = vsel %vm305_vm2, %v292_v11, 0.0  ;;  %v361_v21 = vsel %vm305_vm2, %v302_v12, 0.0  ;;  %v203_v32 = vadd.f32 %v785_v37, %v202_v13 }
 0x101   :  { %v315_v22 = vsel %vm305_vm2, %v291_v15, 0.0  ;;  %v360_v23 = vsel %vm305_vm2, %v301_v16, 0.0  ;;  %v266_v24 = vmax.f32 %v208_v17, 0.0  ;;  %v276_v25 = vmax.f32 %v258_v18, 0.0  ;;  %v568_v26 = vpop.f32.mrb[6].mxu0 }
 0x102   :  { %v310_v27 = vadd.f32 %v309_v19, %v308_v9  ;;  %v317_v28 = vadd.f32 %v316_v20, %v315_v22  ;;  %v362_v29 = vadd.f32 %v361_v21, %v360_v23  ;;  %v212_v30 = vpop.f32.mrb[7].mxu0  ;;  %v253_v33 = vadd.f32 %v785_v37, %v252_v14 }
 0x103   :  { %v294_v31 = vmul.f32 %v791_v46, %v266_v24  ;;  %v304_v38 = vmul.f32 %v791_v46, %v276_v25  ;;  %v218_v39 = vadd.f32 %v568_v26, %v785_v37  ;;  %v265_v40 = vmax.f32 %v203_v32, 0.0 }
 0x104   :  { %v311_v34 = vrot.slane %v310_v27, 2  ;;  %v318_v35 = vrot.slane %v317_v28, 4  ;;  %v275_v41 = vmax.f32 %v253_v33, 0.0  ;;  %v213_v51 = vadd.f32 %v785_v37, %v212_v30 }
 0x105   :  { %v571_v42 = vpop.f32.mrb[8].mxu0  ;;  %v325_v45 = vsel %vm305_vm2, %v294_v31, 0.0  ;;  %v268_v47 = vmax.f32 %v218_v39, 0.0  ;;  %v293_v49 = vmul.f32 %v780_v36, %v265_v40  ;;  %v370_v54 = vsel %vm305_vm2, %v304_v38, 0.0 }
 0x106   :  { %v312_v43 = vadd.f32 %v311_v34, %v310_v27  ;;  %v319_v44 = vadd.f32 %v318_v35, %v317_v28  ;;  %v222_v48 = vpop.f32.mrb[9].mxu0  ;;  %v303_v50 = vmul.f32 %v780_v36, %v275_v41  ;;  %v228_v52 = vadd.f32 %v571_v42, %v785_v37 }
 0x107   :  { %v296_v55 = vmul.f32 %v791_v46, %v268_v47  ;;  %v324_v56 = vsel %vm305_vm2, %v293_v49, 0.0  ;;  %v267_v58 = vmax.f32 %v213_v51, 0.0  ;;  %v223_v4 = vadd.f32 %v785_v37, %v222_v48 }
 0x108   :  { %v320_v53 = vrot.slane %v319_v44, 2  ;;  %v369_v57 = vsel %vm305_vm2, %v303_v50, 0.0  ;;  %v270_v59 = vmax.f32 %v228_v52, 0.0  ;;  %v313_v60 = vrot.slane %v312_v43, 1 }
 0x109   :  { %v326_v62 = vadd.f32 %v325_v45, %v324_v56  ;;  %v371_v63 = vadd.f32 %v370_v54, %v369_v57  ;;  %v334_v0 = vsel %vm305_vm2, %v296_v55, 0.0  ;;  %v295_v1 = vmul.f32 %v780_v36, %v267_v58  ;;  %v516_v57 = vld [vmem:[%s862_s5] ss:$0 sm:$0xff] }
 0x10a   :  { %v321_v61 = vadd.f32 %v320_v53, %v319_v44  ;;  %v354_v5 = vrot.slane %v805_v10, 4  ;;  %v363_v6 = vrot.slane %v362_v29, 4  ;;  %v298_v8 = vmul.f32 %v791_v46, %v270_v59 }
 0x10b   :  { %v327_v3 = vrot.slane %v326_v62, 4  ;;  %v333_v7 = vsel %vm305_vm2, %v295_v1, 0.0  ;;  %v314_v9 = vadd.f32 %v313_v60, %v312_v43  ;;  %v372_v14 = vrot.slane %v371_v63, 4 }
 0x10c   :  { %v322_v2 = vrot.slane %v321_v61, 1  ;;  %v335_v13 = vadd.f32 %v334_v0, %v333_v7  ;;  %v269_v15 = vmax.f32 %v223_v4, 0.0  ;;  %v355_v19 = vadd.f32 %v354_v5, %v805_v10 }
 0x10d   :  { %v328_v12 = vadd.f32 %v327_v3, %v326_v62  ;;  %v343_v37 = vsel %vm305_vm2, %v298_v8, 0.0  ;;  %v364_v21 = vadd.f32 %v363_v6, %v362_v29  ;;  %v373_v24 = vadd.f32 %v372_v14, %v371_v63 }
 0x10e   :  { %v323_v11 = vadd.f32 %v322_v2, %v321_v61  ;;  %v336_v18 = vrot.slane %v335_v13, 4  ;;  %v297_v20 = vmul.f32 %v780_v36, %v269_v15  ;;  %v356_v28 = vrot.slane %v355_v19, 2 }
 0x10f   :  { %v329_v17 = vrot.slane %v328_v12, 2  ;;  %v365_v30 = vrot.slane %v364_v21, 2  ;;  %v374_v10 = vrot.slane %v373_v24, 2 }
 0x110   :  { %v398_v16 = vsel %vm397_vm3, %v323_v11, %v314_v9  ;;  %v337_v23 = vadd.f32 %v336_v18, %v335_v13  ;;  %v342_v46 = vsel %vm305_vm2, %v297_v20, 0.0  ;;  %v357_v36 = vadd.f32 %v356_v28, %v355_v19 }
 0x111   :  { %v330_v22 = vadd.f32 %v329_v17, %v328_v12  ;;  %v344_v27 = vadd.f32 %v343_v37, %v342_v46  ;;  %v366_v29 = vadd.f32 %v365_v30, %v364_v21  ;;  %v375_v41 = vadd.f32 %v374_v10, %v373_v24 }
 0x112   :  { %v338_v26 = vrot.slane %v337_v23, 2  ;;  %v358_v44 = vrot.slane %v357_v36, 1 }
 0x113   :  { %v331_v25 = vrot.slane %v330_v22, 1  ;;  %v345_v33 = vrot.slane %v344_v27, 4  ;;  %v367_v45 = vrot.slane %v366_v29, 1  ;;  %v376_v48 = vrot.slane %v375_v41, 1 }
 0x114   :  { %v339_v32 = vadd.f32 %v338_v26, %v337_v23  ;;  %v359_v50 = vadd.f32 %v358_v44, %v357_v36 }
 0x115   :  { %v332_v31 = vadd.f32 %v331_v25, %v330_v22  ;;  %v346_v38 = vadd.f32 %v345_v33, %v344_v27  ;;  %v368_v51 = vadd.f32 %v367_v45, %v366_v29  ;;  %v377_v53 = vadd.f32 %v376_v48, %v375_v41 }
 0x116   :  { %v340_v35 = vrot.slane %v339_v32, 1 }
 0x117   :  { %v400_v34 = vsel %vm399_vm4, %v332_v31, %v398_v16  ;;  %v347_v40 = vrot.slane %v346_v38, 2 }
 0x118   :  { %v341_v39 = vadd.f32 %v340_v35, %v339_v32 }
 0x119   :  { %v348_v43 = vadd.f32 %v347_v40, %v346_v38 }
 0x11a   :  { %v402_v42 = vsel %vm401_vm5, %v341_v39, %v400_v34 }
 0x11b   :  { %v349_v47 = vrot.slane %v348_v43, 1 }
 0x11d   :  { %v350_v49 = vadd.f32 %v349_v47, %v348_v43 }
 0x11f   :  { %v404_v52 = vsel %vm403_vm6, %v350_v49, %v402_v42 }
 0x120   :  { %v406_v54 = vsel %vm405_vm7, %v359_v50, %v404_v52 }
 0x121   :  { %v408_v55 = vsel %vm407_vm8, %v368_v51, %v406_v54 }
 0x122   :  { %v410_v56 = vsel %vm409_vm9, %v377_v53, %v408_v55 }
 0x123   :  { %590 = vmatmul.mubr.msk.f32.vlgmr.msra.gmra.mrb[6].mxu1 %vm305_vm2, %v410_v56 }
 0x1f6   :  { %v479_v58 = vpop.f32.mrb[6].mxu1 }
 0x1f7   :  { %v480_v59 = vadd.f32 %v516_v57, %v479_v58  ;;  %v591_v60 = vpop.f32.mrb[7].mxu1 }
 0x1f9   :  { %483 = vst [vmem:[#allocation5] sm:$0xff] %v480_v59 }
 0x1fa   :  { %658 = shalt.err (!%p655_p12)
}
 0x1fb   :  { %s659_s15 = scalar_lea.hbm %s863_s6, 128 }
 0x1fc   :  { %p660_p13 = scmp.ne.s32.totalorder %s863_s6, %s659_s15  ;;  %p663_p0 = scmp.lt.u32.totalorder %s659_s15, %s863_s6 }
 0x1fe   :  { %p665_p1 = pnand %p663_p0, %p660_p13 }
 0x200   :  { %668 = shalt.err (!%p665_p1)
}
 0x201   :  { %493 = dma.vmem_to_hbm [thread:$0]  %s491_s11, 128, %s863_s6, [#allocation4]  }
 0x202   :  { %671 = dma.done.wait [#allocation4], 128  }
 0x203   :  { %672 = vsyncadd [#allocation4], 4294967168 }
 0x204   :  { %497 = vsyncpa [#allocation3], 1 }
 0x205   :  { %498 = vsyncpa [#allocation4], 1 }

</bundles_post_ra>
